<compile_context>
chip_gen: v7x
topology: tpu7x:2x2x1
jax: 0.10.0
libtpu: 0.0.40
codegen_flags: <defaults>
</compile_context>

<pallas_src>
import functools

import jax
import jax.numpy as jnp
from jax.experimental import pallas as pl
from jax.experimental.pallas import tpu as pltpu

LANE = 128


def _round_up(n, m):
    return ((n + m - 1) // m) * m


def _mlp_fused_kernel(*refs, n_inputs, n_linear):
    """Fused MLP: o = W_{L-1}(relu(... relu(W_0 @ [x, t] + b_0) ...)) + b_{L-1}.

    refs layout (inputs, then outputs, then scratch):
      x_refs[0..n_inputs)          activations feeding layer 0 (x, optionally t)
      w0_refs[0..n_inputs)         layer-0 weight, split to match x_refs
      b0_ref                       layer-0 bias, shape (1, hidden)
      (w_i, b_i), i = 1..L-1       remaining layers (last one lane-padded)
      o_ref                        (bm, n_pad) lane-dense output block
      h_ref                        (bm, hidden) f32 VMEM scratch (hidden act)
    """
    x_refs = refs[:n_inputs]
    w0_refs = refs[n_inputs:2 * n_inputs]
    b0_ref = refs[2 * n_inputs]
    tail = refs[2 * n_inputs + 1:]
    wb_refs = [(tail[2 * i], tail[2 * i + 1]) for i in range(n_linear - 1)]
    o_ref = tail[2 * (n_linear - 1)]
    h_ref = tail[2 * (n_linear - 1) + 1]

    # ---- layer 0: fused x/t concat -> one dot per piece, shared f32 acc ----
    acc = jnp.dot(x_refs[0][...].astype(w0_refs[0].dtype), w0_refs[0][...],
                  preferred_element_type=jnp.float32)
    for xr, wr in zip(x_refs[1:], w0_refs[1:]):
        acc = acc + jnp.dot(xr[...].astype(wr.dtype), wr[...],
                            preferred_element_type=jnp.float32)
    acc = acc + b0_ref[...].astype(jnp.float32)
    h_ref[...] = jnp.maximum(acc, 0.0)          # ReLU on f32; stays in VMEM

    # ---- hidden layers 1..L-2 (ReLU) and output layer L-1 (no ReLU) ----
    for li, (w_ref, b_ref) in enumerate(wb_refs):
        h = h_ref[...].astype(w_ref.dtype)      # cast only for the MXU feed
        acc = jnp.dot(h, w_ref[...], preferred_element_type=jnp.float32)
        acc = acc + b_ref[...].astype(jnp.float32)
        if li < n_linear - 2:                   # hidden layer
            h_ref[...] = jnp.maximum(acc, 0.0)
        else:                                   # output layer: lane-dense store
            o_ref[...] = acc.astype(o_ref.dtype)


def mlp_forward_pallas(params, x, t=None):
    """params: list of (w, b) with w pre-transposed to (in, out). x: (B, Kx)."""
    n_linear = len(params)
    assert n_linear >= 2, "MLP module always builds >= 2 Linear layers"
    B = x.shape[0]
    hidden_dim = params[0][0].shape[1]
    out_dim = params[-1][0].shape[1]
    n_pad = _round_up(out_dim, LANE)

    # Layer-0 inputs / weight pieces (fused t-concat: no HBM concat needed).
    w0, b0 = params[0]
    if t is not None:
        kx = x.shape[1]
        assert w0.shape[0] == kx + t.shape[1]
        inputs = [x, t]
        w0_pieces = [w0[:kx, :], w0[kx:, :]]
    else:
        assert w0.shape[0] == x.shape[1]
        inputs = [x]
        w0_pieces = [w0]
    n_inputs = len(inputs)

    # Lane-dense last layer: zero-pad output width up to a multiple of 128.
    w_last, b_last = params[-1]
    if n_pad != out_dim:
        w_last = jnp.pad(w_last, ((0, 0), (0, n_pad - out_dim)))
        b_last = jnp.pad(b_last, (0, n_pad - out_dim))
    layer_wb = list(params[1:-1]) + [(w_last, b_last)]

    # Batch tiling: one full tile for small B; big row tiles when B is large.
    bm = B
    for cand in (512, 256, 128):
        if B > cand and B % cand == 0:
            bm = cand
            break
    grid = (B // bm,)

    operands = []
    in_specs = []
    for a in inputs:
        operands.append(a)
        in_specs.append(pl.BlockSpec((bm, a.shape[1]), lambda i: (i, 0)))
    for w in w0_pieces:
        operands.append(w)
        in_specs.append(pl.BlockSpec(w.shape, lambda i: (0, 0)))
    operands.append(b0.reshape(1, -1))
    in_specs.append(pl.BlockSpec((1, b0.shape[0]), lambda i: (0, 0)))
    for w, b in layer_wb:
        operands.append(w)
        in_specs.append(pl.BlockSpec(w.shape, lambda i: (0, 0)))
        operands.append(b.reshape(1, -1))
        in_specs.append(pl.BlockSpec((1, b.shape[0]), lambda i: (0, 0)))

    out_specs = pl.BlockSpec((bm, n_pad), lambda i: (i, 0))
    out_shape = jax.ShapeDtypeStruct((B, n_pad), x.dtype)

    # Advisory cost estimate: lets XLA schedule around this tiny custom call.
    flops = 2 * B * w0.shape[0] * hidden_dim
    for w, _ in layer_wb:
        flops += 2 * B * w.shape[0] * w.shape[1]
    bytes_accessed = sum(int(a.size) * a.dtype.itemsize for a in operands)
    bytes_accessed += B * n_pad * jnp.dtype(x.dtype).itemsize
    cost = pl.CostEstimate(flops=flops, transcendentals=0,
                           bytes_accessed=bytes_accessed)

    # Single-block-weights strategy: everything must fit VMEM (double-buffered
    # inputs + output + f32 scratch). Conservative guard for v7x's 64 MiB VMEM.
    # TODO(synk): add an explicit (tm, tn, tk)-tiled path for hidden sizes that
    # exceed this budget.
    vmem_est = 2 * sum(int(a.size) * a.dtype.itemsize for a in operands)
    vmem_est += 2 * bm * n_pad * jnp.dtype(x.dtype).itemsize
    vmem_est += bm * hidden_dim * 4
    assert vmem_est < 24 * 1024 * 1024, "MLP weights too large for fused kernel"

    kernel = functools.partial(_mlp_fused_kernel,
                               n_inputs=n_inputs, n_linear=n_linear)
    out = pl.pallas_call(
        kernel,
        out_shape=out_shape,
        grid=grid,
        in_specs=in_specs,
        out_specs=out_specs,
        scratch_shapes=[pltpu.VMEM((bm, hidden_dim), jnp.float32)],
        compiler_params=pltpu.CompilerParams(
            dimension_semantics=("parallel",)),
        cost_estimate=cost,
    )(*operands)
    return out[:, :out_dim]


def init_mlp_params(key, input_dim, hidden_dim, output_dim, num_layers,
                    dtype=jnp.float32):
    """Matches nn.Linear default init U(-1/sqrt(fan_in), +1/sqrt(fan_in)).

    Weights are stored pre-transposed as (in_features, out_features) so the
    kernel computes a plain x @ W + b on the MXU.
    """
    dims = [input_dim] + [hidden_dim] * num_layers + [output_dim]
    params = []
    for fan_in, fan_out in zip(dims[:-1], dims[1:]):
        key, kw, kb = jax.random.split(key, 3)
        bound = 1.0 / float(fan_in) ** 0.5
        w = jax.random.uniform(kw, (fan_in, fan_out), dtype, -bound, bound)
        b = jax.random.uniform(kb, (fan_out,), dtype, -bound, bound)
        params.append((w, b))
    return params


def mlp_reference(params, x, t=None):
    """Pure-JAX reference mirroring MLP.forward."""
    if t is not None:
        x = jnp.concatenate((x, t), axis=1)
    for w, b in params[:-1]:
        x = jax.nn.relu(x @ w + b)
    w, b = params[-1]
    return x @ w + b


if __name__ == "__main__":
    # Small shapes consistent with the module: num_layers=2 -> 3 Linear layers.
    batch = 8
    input_dim = 64
    hidden_dim = 128
    output_dim = 16
    num_layers = 2

    key = jax.random.PRNGKey(0)
    key, kparams, kx, kt = jax.random.split(key, 4)
    params = init_mlp_params(kparams, input_dim, hidden_dim, output_dim,
                             num_layers, dtype=jnp.float32)

    fwd = jax.jit(mlp_forward_pallas)

    # 1) plain forward (t=None), f32 weights.
    x = jax.random.normal(kx, (batch, input_dim), jnp.float32)
    out = jax.block_until_ready(fwd(params, x))
    ref = mlp_reference(params, x)
    assert out.shape == (batch, output_dim), out.shape
    assert jnp.allclose(out, ref, atol=1e-4, rtol=1e-4), "f32 mismatch"

    # 2) forward with the optional t input fused into layer 0 (no concat).
    xd, td = 48, 16                    # xd + td == input_dim
    x2 = jax.random.normal(kx, (batch, xd), jnp.float32)
    t2 = jax.random.normal(kt, (batch, td), jnp.float32)
    out2 = jax.block_until_ready(fwd(params, x2, t2))
    ref2 = mlp_reference(params, x2, t2)
    assert out2.shape == (batch, output_dim), out2.shape
    assert jnp.allclose(out2, ref2, atol=1e-4, rtol=1e-4), "t-fused mismatch"

    # 3) bf16 weights (v6e/v7x MXU-native); f32 accumulation + f32 epilogue.
    params_bf16 = [(w.astype(jnp.bfloat16), b.astype(jnp.bfloat16))
                   for w, b in params]
    out3 = jax.block_until_ready(fwd(params_bf16, x))
    ref3 = mlp_reference([(w.astype(jnp.float32), b.astype(jnp.float32))
                          for w, b in params_bf16], x)
    assert jnp.allclose(out3, ref3, atol=1e-1, rtol=5e-2), "bf16 mismatch"

    print("KERNEL_OK")
</pallas_src>

<mosaic_0001>
module attributes {stable_mosaic.version = 11 : i64} {
  func.func @_mlp_fused_kernel(%arg0: i32, %arg1: memref<8x64xf32, #tpu.memory_space<vmem>>, %arg2: memref<64x128xf32, #tpu.memory_space<vmem>>, %arg3: memref<1x128xf32, #tpu.memory_space<vmem>>, %arg4: memref<128x128xf32, #tpu.memory_space<vmem>>, %arg5: memref<1x128xf32, #tpu.memory_space<vmem>>, %arg6: memref<128x128xf32, #tpu.memory_space<vmem>>, %arg7: memref<1x128xf32, #tpu.memory_space<vmem>>, %arg8: memref<8x128xf32, #tpu.memory_space<vmem>>, %arg9: memref<8x128xf32, #tpu.memory_space<vmem>>) attributes {dimension_semantics = [#tpu.dimension_semantics<parallel>], iteration_bounds = array<i64: 1>, scalar_prefetch = 0 : i64, scratch_operands = 1 : i64, tpu.core_type = #tpu.core_type<tc>, window_params = [{transform_indices = @transform_0, window_bounds = array<i64: 8, 64>}, {pipeline_mode = #tpu.pipeline_mode<synchronous>, transform_indices = @transform_1, window_bounds = array<i64: 64, 128>}, {pipeline_mode = #tpu.pipeline_mode<synchronous>, transform_indices = @transform_2, window_bounds = array<i64: 1, 128>}, {pipeline_mode = #tpu.pipeline_mode<synchronous>, transform_indices = @transform_3, window_bounds = array<i64: 128, 128>}, {pipeline_mode = #tpu.pipeline_mode<synchronous>, transform_indices = @transform_4, window_bounds = array<i64: 1, 128>}, {pipeline_mode = #tpu.pipeline_mode<synchronous>, transform_indices = @transform_5, window_bounds = array<i64: 128, 128>}, {pipeline_mode = #tpu.pipeline_mode<synchronous>, transform_indices = @transform_6, window_bounds = array<i64: 1, 128>}, {transform_indices = @transform_7, window_bounds = array<i64: 8, 128>}]} {
    %c0 = arith.constant 0 : index
    %c0_0 = arith.constant 0 : index
    %0 = vector.load %arg1[%c0, %c0_0] : memref<8x64xf32, #tpu.memory_space<vmem>>, vector<8x64xf32>
    %c0_1 = arith.constant 0 : index
    %c0_2 = arith.constant 0 : index
    %1 = vector.load %arg2[%c0_1, %c0_2] : memref<64x128xf32, #tpu.memory_space<vmem>>, vector<64x128xf32>
    %cst = arith.constant dense<0.000000e+00> : vector<8x128xf32>
    %2 = tpu.matmul %0, %1, %cst {dimension_numbers = #tpu.dot_dimension_numbers<[1], [0], [0], [1], [0, 0, 1, 1], [], []>} : vector<8x64xf32>, vector<64x128xf32>, vector<8x128xf32> -> vector<8x128xf32>
    %c0_3 = arith.constant 0 : index
    %c0_4 = arith.constant 0 : index
    %3 = vector.load %arg3[%c0_3, %c0_4] : memref<1x128xf32, #tpu.memory_space<vmem>>, vector<1x128xf32>
    %4 = vector.broadcast %3 : vector<1x128xf32> to vector<8x128xf32>
    %5 = arith.addf %2, %4 : vector<8x128xf32>
    %cst_5 = arith.constant 0.000000e+00 : f32
    %6 = vector.broadcast %cst_5 : f32 to vector<8x128xf32>
    %7 = arith.maximumf %5, %6 : vector<8x128xf32>
    %c0_6 = arith.constant 0 : index
    %c0_7 = arith.constant 0 : index
    %8 = vector.load %arg9[%c0_6, %c0_7] : memref<8x128xf32, #tpu.memory_space<vmem>>, vector<8x128xf32>
    tpu.vector_store %arg9[%c0_6, %c0_7], %7 {strides = array<i32>} : memref<8x128xf32, #tpu.memory_space<vmem>>, vector<8x128xf32>,
    %c0_8 = arith.constant 0 : index
    %c0_9 = arith.constant 0 : index
    %9 = vector.load %arg9[%c0_8, %c0_9] : memref<8x128xf32, #tpu.memory_space<vmem>>, vector<8x128xf32>
    %c0_10 = arith.constant 0 : index
    %c0_11 = arith.constant 0 : index
    %10 = vector.load %arg4[%c0_10, %c0_11] : memref<128x128xf32, #tpu.memory_space<vmem>>, vector<128x128xf32>
    %cst_12 = arith.constant dense<0.000000e+00> : vector<8x128xf32>
    %11 = tpu.matmul %9, %10, %cst_12 {dimension_numbers = #tpu.dot_dimension_numbers<[1], [0], [0], [1], [0, 0, 1, 1], [], []>} : vector<8x128xf32>, vector<128x128xf32>, vector<8x128xf32> -> vector<8x128xf32>
    %c0_13 = arith.constant 0 : index
    %c0_14 = arith.constant 0 : index
    %12 = vector.load %arg5[%c0_13, %c0_14] : memref<1x128xf32, #tpu.memory_space<vmem>>, vector<1x128xf32>
    %13 = vector.broadcast %12 : vector<1x128xf32> to vector<8x128xf32>
    %14 = arith.addf %11, %13 : vector<8x128xf32>
    %cst_15 = arith.constant 0.000000e+00 : f32
    %15 = vector.broadcast %cst_15 : f32 to vector<8x128xf32>
    %16 = arith.maximumf %14, %15 : vector<8x128xf32>
    %c0_16 = arith.constant 0 : index
    %c0_17 = arith.constant 0 : index
    %17 = vector.load %arg9[%c0_16, %c0_17] : memref<8x128xf32, #tpu.memory_space<vmem>>, vector<8x128xf32>
    tpu.vector_store %arg9[%c0_16, %c0_17], %16 {strides = array<i32>} : memref<8x128xf32, #tpu.memory_space<vmem>>, vector<8x128xf32>,
    %c0_18 = arith.constant 0 : index
    %c0_19 = arith.constant 0 : index
    %18 = vector.load %arg9[%c0_18, %c0_19] : memref<8x128xf32, #tpu.memory_space<vmem>>, vector<8x128xf32>
    %c0_20 = arith.constant 0 : index
    %c0_21 = arith.constant 0 : index
    %19 = vector.load %arg6[%c0_20, %c0_21] : memref<128x128xf32, #tpu.memory_space<vmem>>, vector<128x128xf32>
    %cst_22 = arith.constant dense<0.000000e+00> : vector<8x128xf32>
    %20 = tpu.matmul %18, %19, %cst_22 {dimension_numbers = #tpu.dot_dimension_numbers<[1], [0], [0], [1], [0, 0, 1, 1], [], []>} : vector<8x128xf32>, vector<128x128xf32>, vector<8x128xf32> -> vector<8x128xf32>
    %c0_23 = arith.constant 0 : index
    %c0_24 = arith.constant 0 : index
    %21 = vector.load %arg7[%c0_23, %c0_24] : memref<1x128xf32, #tpu.memory_space<vmem>>, vector<1x128xf32>
    %22 = vector.broadcast %21 : vector<1x128xf32> to vector<8x128xf32>
    %23 = arith.addf %20, %22 : vector<8x128xf32>
    %c0_25 = arith.constant 0 : index
    %c0_26 = arith.constant 0 : index
    %24 = vector.load %arg8[%c0_25, %c0_26] : memref<8x128xf32, #tpu.memory_space<vmem>>, vector<8x128xf32>
    tpu.vector_store %arg8[%c0_25, %c0_26], %23 {strides = array<i32>} : memref<8x128xf32, #tpu.memory_space<vmem>>, vector<8x128xf32>,
    return
  }
  func.func @transform_0(%arg0: i32) -> (i32, i32) {
    %c0_i32 = arith.constant 0 : i32
    %c0_i32_0 = arith.constant 0 : i32
    return %arg0, %c0_i32 : i32, i32
  }
  func.func @transform_1(%arg0: i32) -> (i32, i32) {
    %c0_i32 = arith.constant 0 : i32
    %c0_i32_0 = arith.constant 0 : i32
    %c0_i32_1 = arith.constant 0 : i32
    return %c0_i32, %c0_i32_0 : i32, i32
  }
  func.func @transform_2(%arg0: i32) -> (i32, i32) {
    %c0_i32 = arith.constant 0 : i32
    %c0_i32_0 = arith.constant 0 : i32
    %c0_i32_1 = arith.constant 0 : i32
    return %c0_i32, %c0_i32_0 : i32, i32
  }
  func.func @transform_3(%arg0: i32) -> (i32, i32) {
    %c0_i32 = arith.constant 0 : i32
    %c0_i32_0 = arith.constant 0 : i32
    %c0_i32_1 = arith.constant 0 : i32
    return %c0_i32, %c0_i32_0 : i32, i32
  }
  func.func @transform_4(%arg0: i32) -> (i32, i32) {
    %c0_i32 = arith.constant 0 : i32
    %c0_i32_0 = arith.constant 0 : i32
    %c0_i32_1 = arith.constant 0 : i32
    return %c0_i32, %c0_i32_0 : i32, i32
  }
  func.func @transform_5(%arg0: i32) -> (i32, i32) {
    %c0_i32 = arith.constant 0 : i32
    %c0_i32_0 = arith.constant 0 : i32
    %c0_i32_1 = arith.constant 0 : i32
    return %c0_i32, %c0_i32_0 : i32, i32
  }
  func.func @transform_6(%arg0: i32) -> (i32, i32) {
    %c0_i32 = arith.constant 0 : i32
    %c0_i32_0 = arith.constant 0 : i32
    %c0_i32_1 = arith.constant 0 : i32
    return %c0_i32, %c0_i32_0 : i32, i32
  }
  func.func @transform_7(%arg0: i32) -> (i32, i32) {
    %c0_i32 = arith.constant 0 : i32
    %c0_i32_0 = arith.constant 0 : i32
    return %arg0, %c0_i32 : i32, i32
  }
}

</mosaic_0001>

<bundles_post_ra>
// kernel: mlp_forward_pallas.1
= control target key start
LH: loop header
LB: loop body
LE: loop exit
PB: predicated region body
PF: predicated region fallthrough
CT: control target
= control target key end

     0   :  { %v548_v3 = vmov 0.0|0.0   ;;  %vm549_vm0 = vmmov 0   ;;  %v550_v6 = vmov 0.0   ;;  %s759_s0 = inlined_call_operand.vmem [shape: f32[8,64], index: 0, kind: input, shape index: {}]   ;;  %s760_s1 = inlined_call_operand.vmem [shape: f32[64,128], index: 1, kind: input, shape index: {}]   ;;  %s761_s2 = inlined_call_operand.vmem [shape: f32[1,128], index: 2, kind: input, shape index: {}]   ;;  %s762_s3 = inlined_call_operand.vmem [shape: f32[128,128], index: 3, kind: input, shape index: {}]   ;;  %s763_s4 = inlined_call_operand.vmem [shape: f32[1,128], index: 4, kind: input, shape index: {}]   ;;  %s764_s5 = inlined_call_operand.vmem [shape: f32[128,128], index: 5, kind: input, shape index: {}]   ;;  %s765_s6 = inlined_call_operand.vmem [shape: f32[1,128], index: 6, kind: input, shape index: {}]   ;;  %s766_s7 = inlined_call_operand.hbm [shape: f32[8,128], index: 7, kind: output, shape index: {}]  }
   0x1   :  { %v28_v0 = vld [vmem:[%s760_s1] sm:$0xff]  ;;  %v29_v1 = vld [vmem:[%s760_s1 + $0x8] sm:$0xff]  ;;  %v30_v2 = vld [vmem:[%s760_s1 + $0x10] sm:$0xff]  ;;  %460 = vmatprep.subr.bf16.mxu0 %v548_v3  ;;  %387 = vmatprep.mubr.msk.f32.mxu0 %vm549_vm0, %v550_v6 }
   0x2   :  { %v461_v4 = vpack.c.bf16 %v29_v1, %v28_v0  ;;  %v31_v5 = vld [vmem:[%s760_s1 + $0x18] sm:$0xff]  ;;  %472 = vmatprep.subr.bf16.mxu1 %v548_v3  ;;  %422 = vmatprep.mubr.msk.f32.mxu1 %vm549_vm0, %v550_v6  ;;  %v120_v8 = vld [vmem:[%s762_s3] sm:$0xff]  ;;  %v121_v9 = vld [vmem:[%s762_s3 + $0x8] sm:$0xff] }
   0x3   :  { %v464_v7 = vpack.c.bf16 %v31_v5, %v30_v2  ;;  %v122_v10 = vld [vmem:[%s762_s3 + $0x10] sm:$0xff]  ;;  %v32_v11 = vld [vmem:[%s760_s1 + $0x20] sm:$0xff]  ;;  %v33_v12 = vld [vmem:[%s760_s1 + $0x28] sm:$0xff]  ;;  %v473_v13 = vpack.c.bf16 %v121_v9, %v120_v8 }
   0x4   :  { %462 = vmatpush3.bf16.msra.mxu0 %v461_v4  ;;  %v123_v14 = vld [vmem:[%s762_s3 + $0x18] sm:$0xff]  ;;  %v467_v16 = vpack.c.bf16 %v33_v12, %v32_v11  ;;  %v124_v17 = vld [vmem:[%s762_s3 + $0x20] sm:$0xff]  ;;  %v125_v18 = vld [vmem:[%s762_s3 + $0x28] sm:$0xff] }
   0x5   :  { %463 = vmatprep.subr.bf16.mxu0 %v548_v3  ;;  %474 = vmatpush3.bf16.msra.mxu1 %v473_v13  ;;  %v476_v15 = vpack.c.bf16 %v123_v14, %v122_v10  ;;  %v34_v19 = vld [vmem:[%s760_s1 + $0x30] sm:$0xff]  ;;  %v35_v20 = vld [vmem:[%s760_s1 + $0x38] sm:$0xff] }
   0x6   :  { %475 = vmatprep.subr.bf16.mxu1 %v548_v3 }
   0x8   :  { %465 = vmatpush3.bf16.msra.mxu0 %v464_v7 }
   0x9   :  { %466 = vmatprep.subr.bf16.mxu0 %v548_v3 }
   0xa   :  { %12 = vsyncpa [#allocation4], 0  ;;  %477 = vmatpush3.bf16.msra.mxu1 %v476_v15  ;;  %v479_v21 = vpack.c.bf16 %v125_v18, %v124_v17  ;;  %v470_v22 = vpack.c.bf16 %v35_v20, %v34_v19  ;;  %v126_v23 = vld [vmem:[%s762_s3 + $0x30] sm:$0xff]  ;;  %v127_v24 = vld [vmem:[%s762_s3 + $0x38] sm:$0xff]  ;;  %vm43_vm1 = vcmask 523264   ;;  %s551_s12 = smov [#allocation3]  }
   0xb   :  { %478 = vmatprep.subr.bf16.mxu1 %v548_v3  ;;  %v482_v25 = vpack.c.bf16 %v127_v24, %v126_v23  ;;  %v27_v26 = vld [vmem:[%s759_s0] sm:$0xff]  ;;  %v129_v28 = vld [vmem:[%s762_s3 + $0x48] sm:$0xff]  ;;  %v130_v30 = vld [vmem:[%s762_s3 + $0x50] sm:$0xff]  ;;  %s316_s13 = sshll.u32 %s551_s12, 4  ;;  %s317_s13 = int_to_ptr.vmem [resolvable:$true] %s316_s13 }
   0xc   :  { %468 = vmatpush3.bf16.msra.mxu0 %v467_v16  ;;  %v128_v27 = vld [vmem:[%s762_s3 + $0x40] sm:$0xff]  ;;  %v131_v31 = vld [vmem:[%s762_s3 + $0x58] sm:$0xff]  ;;  %v133_v34 = vld [vmem:[%s762_s3 + $0x68] sm:$0xff]  ;;  %p529_p1 = scmp.lt.s32.totalorder %s317_s13, %s317_s13 }
   0xd   :  { %469 = vmatprep.subr.bf16.mxu0 %v548_v3  ;;  %v485_v29 = vpack.c.bf16 %v129_v28, %v128_v27  ;;  %v488_v32 = vpack.c.bf16 %v131_v31, %v130_v30  ;;  %v132_v33 = vld [vmem:[%s762_s3 + $0x60] sm:$0xff]  ;;  %v134_v36 = vld [vmem:[%s762_s3 + $0x70] sm:$0xff]  ;;  %v135_v37 = vld [vmem:[%s762_s3 + $0x78] sm:$0xff] }
   0xe   :  { %480 = vmatpush3.bf16.msra.mxu1 %v479_v21  ;;  %v491_v35 = vpack.c.bf16 %v133_v34, %v132_v33  ;;  %v494_v38 = vpack.c.bf16 %v135_v37, %v134_v36  ;;  %v216_v39 = vld [vmem:[%s764_s5] sm:$0xff]  ;;  %v217_v40 = vld [vmem:[%s764_s5 + $0x8] sm:$0xff]  ;;  %v218_v41 = vld [vmem:[%s764_s5 + $0x10] sm:$0xff] }
   0xf   :  { %481 = vmatprep.subr.bf16.mxu1 %v548_v3  ;;  %v497_v42 = vpack.c.bf16 %v217_v40, %v216_v39  ;;  %v219_v43 = vld [vmem:[%s764_s5 + $0x18] sm:$0xff]  ;;  %v220_v45 = vld [vmem:[%s764_s5 + $0x20] sm:$0xff]  ;;  %v221_v46 = vld [vmem:[%s764_s5 + $0x28] sm:$0xff] }
  0x10   :  { %471 = vmatpush3.bf16.msra.mxu0 %v470_v22  ;;  %v500_v44 = vpack.c.bf16 %v219_v43, %v218_v41  ;;  %v503_v47 = vpack.c.bf16 %v221_v46, %v220_v45  ;;  %v222_v48 = vld [vmem:[%s764_s5 + $0x30] sm:$0xff]  ;;  %v223_v49 = vld [vmem:[%s764_s5 + $0x38] sm:$0xff]  ;;  %v224_v51 = vld [vmem:[%s764_s5 + $0x40] sm:$0xff] }
  0x11   :  { %496 = vmatprep.subr.bf16.mxu0 %v548_v3  ;;  %v506_v50 = vpack.c.bf16 %v223_v49, %v222_v48  ;;  %v225_v52 = vld [vmem:[%s764_s5 + $0x48] sm:$0xff]  ;;  %v226_v54 = vld [vmem:[%s764_s5 + $0x50] sm:$0xff]  ;;  %v227_v55 = vld [vmem:[%s764_s5 + $0x58] sm:$0xff] }
  0x12   :  { %483 = vmatpush3.bf16.msra.mxu1 %v482_v25  ;;  %v509_v53 = vpack.c.bf16 %v225_v52, %v224_v51  ;;  %v512_v56 = vpack.c.bf16 %v227_v55, %v226_v54  ;;  %v228_v57 = vld [vmem:[%s764_s5 + $0x60] sm:$0xff]  ;;  %v229_v58 = vld [vmem:[%s764_s5 + $0x68] sm:$0xff]  ;;  %v230_v1 = vld [vmem:[%s764_s5 + $0x70] sm:$0xff] }
  0x13   :  { %388 = vmatmul.mubr.msk.f32.vlgmr.msra.gmra.mrb[0].mxu0 %vm43_vm1, %v27_v26  ;;  %484 = vmatprep.subr.bf16.mxu1 %v548_v3  ;;  %v515_v59 = vpack.c.bf16 %v229_v58, %v228_v57  ;;  %v324_v60 = vld [vmem:[%s761_s2] ss:$0 sm:$0xff]  ;;  %v231_v2 = vld [vmem:[%s764_s5 + $0x78] sm:$0xff]  ;;  %s524_s5 = scalar_lea.vmem %s317_s13, 128 }
  0x14   :  { %457 = vmatprep.mubr.msk.f32.mxu0 %vm549_vm0, %v550_v6  ;;  %498 = vmatpush3.bf16.msra.mxu0 %v497_v42  ;;  %v518_v4 = vpack.c.bf16 %v231_v2, %v230_v1  ;;  %v327_v9 = vld [vmem:[%s765_s6] ss:$0 sm:$0xff]  ;;  %p525_p0 = scmp.ne.s32.totalorder %s317_s13, %s524_s5  ;;  %p530_p2 = scmp.lt.s32.totalorder %s524_s5, %s524_s5 }
  0x15   :  { %499 = vmatprep.subr.bf16.mxu0 %v548_v3 }
  0x16   :  { %486 = vmatpush3.bf16.msra.mxu1 %v485_v29  ;;  %p531_p3 = por %p530_p2, %p529_p1 }
  0x17   :  { %487 = vmatprep.subr.bf16.mxu1 %v548_v3 }
  0x18   :  { %501 = vmatpush3.bf16.msra.mxu0 %v500_v44  ;;  %p532_p4 = pnand %p531_p3, %p525_p0 }
  0x19   :  { %502 = vmatprep.subr.bf16.mxu0 %v548_v3 }
  0x1a   :  { %489 = vmatpush3.bf16.msra.mxu1 %v488_v32 }
  0x1b   :  { %490 = vmatprep.subr.bf16.mxu1 %v548_v3 }
  0x1c   :  { %504 = vmatpush3.bf16.msra.mxu0 %v503_v47 }
  0x1d   :  { %505 = vmatprep.subr.bf16.mxu0 %v548_v3 }
  0x1e   :  { %492 = vmatpush3.bf16.msra.mxu1 %v491_v35 }
  0x1f   :  { %493 = vmatprep.subr.bf16.mxu1 %v548_v3 }
  0x20   :  { %507 = vmatpush3.bf16.msra.mxu0 %v506_v50 }
  0x21   :  { %508 = vmatprep.subr.bf16.mxu0 %v548_v3 }
  0x22   :  { %495 = vmatpush3.bf16.msra.mxu1 %v494_v38 }
  0x24   :  { %510 = vmatpush3.bf16.msra.mxu0 %v509_v53 }
  0x25   :  { %511 = vmatprep.subr.bf16.mxu0 %v548_v3 }
  0x28   :  { %513 = vmatpush3.bf16.msra.mxu0 %v512_v56 }
  0x29   :  { %514 = vmatprep.subr.bf16.mxu0 %v548_v3 }
  0x2c   :  { %516 = vmatpush3.bf16.msra.mxu0 %v515_v59 }
  0x2d   :  { %517 = vmatprep.subr.bf16.mxu0 %v548_v3  ;;  %v326_v3 = vld [vmem:[%s763_s4] ss:$0 sm:$0xff] }
  0x30   :  { %519 = vmatpush3.bf16.msra.mxu0 %v518_v4 }
  0xe6   :  { %v113_v61 = vpop.f32.mrb[0].mxu0 }
  0xe7   :  { %v114_v62 = vadd.f32 %v324_v60, %v113_v61  ;;  %v389_v63 = vpop.f32.mrb[1].mxu0 }
  0xe9   :  { %v117_v0 = vmax.f32 %v114_v62, 0.0 }
  0xeb   :  { %423 = vmatmul.mubr.f32.vlgmr.msra.gmra.mrb[0].mxu1 %v117_v0 }
 0x1be   :  { %v209_v5 = vpop.f32.mrb[0].mxu1 }
 0x1bf   :  { %v210_v6 = vadd.f32 %v326_v3, %v209_v5  ;;  %v424_v7 = vpop.f32.mrb[1].mxu1 }
 0x1c1   :  { %v213_v8 = vmax.f32 %v210_v6, 0.0 }
 0x1c3   :  { %458 = vmatmul.mubr.f32.vlgmr.msra.gmra.mrb[2].mxu0 %v213_v8 }
 0x296   :  { %v305_v10 = vpop.f32.mrb[2].mxu0 }
 0x297   :  { %v306_v11 = vadd.f32 %v327_v9, %v305_v10  ;;  %v459_v12 = vpop.f32.mrb[3].mxu0 }
 0x299   :  { %309 = vst [vmem:[#allocation3] sm:$0xff] %v306_v11 }
 0x29a   :  { %535 = shalt.err (!%p532_p4)
}
 0x29b   :  { %s536_s15 = scalar_lea.hbm %s766_s7, 128 }
 0x29c   :  { %p537_p5 = scmp.ne.s32.totalorder %s766_s7, %s536_s15  ;;  %p540_p6 = scmp.lt.u32.totalorder %s536_s15, %s766_s7 }
 0x29e   :  { %p542_p7 = pnand %p540_p6, %p537_p5 }
 0x2a0   :  { %545 = shalt.err (!%p542_p7)
}
 0x2a1   :  { %319 = dma.vmem_to_hbm [thread:$0]  %s317_s13, 128, %s766_s7, [#allocation4]  }
 0x2a2   :  { %546 = dma.done.wait [#allocation4], 128  }
 0x2a3   :  { %547 = vsyncadd [#allocation4], 4294967168 }
 0x2a4   :  { %323 = vsyncpa [#allocation4], 1 }

</bundles_post_ra>
